<compile_context>
chip_gen: v6e
topology: v6e:2x2x1
jax: 0.10.0
libtpu: 0.0.40
codegen_flags: <defaults>
</compile_context>

<pallas_src>
import functools

import jax
import jax.numpy as jnp
from jax.experimental import pallas as pl
from jax.experimental.pallas import tpu as pltpu


def _cdiv(a: int, b: int) -> int:
    return (a + b - 1) // b


def _largest_divisor_leq(n: int, cap: int) -> int:
    cap = max(1, min(n, cap))
    for d in range(cap, 0, -1):
        if n % d == 0:
            return d
    return 1


def _vmem_capacity_bytes() -> int:
    try:
        return int(pltpu.get_tpu_info().vmem_capacity_bytes)
    except Exception:
        return 64 << 20   # conservative (v7x-sized) fallback


def _vmem_estimate(bt, tlc, tla, d, in_item, out_item):
    """Itemized per-step VMEM estimate (double-buffered blocks + kernel temps)."""
    in_bufs = 2 * bt * (tlc + tla) * d * in_item      # pipelined input blocks
    w_bufs = 2 * 3 * d * 4                            # weight block (f32)
    out_bufs = 2 * bt * tlc * tla * out_item          # pipelined output block
    temps = (bt * (tlc + tla) * d * 4                 # f32 upcasts for row scores
             + bt * tlc * d * in_item                 # ctx * w3
             + bt * tlc * tla * 4                     # f32 matmul accumulator
             + bt * tlc * tla * out_item)             # cast before store
    return in_bufs + w_bufs + out_bufs + temps


def _alignment_kernel(ctx_ref, asp_ref, w_ref, out_ref):
    # ctx_ref: (Bt, TLc, D)   asp_ref: (Bt, TLa, D)   w_ref: (3, D) f32
    # out_ref: (Bt, TLc, TLa)
    f32 = jnp.float32
    ctx = ctx_ref[...]
    asp = asp_ref[...]
    dt = ctx.dtype
    w = w_ref[...]                       # (3, D) f32
    w1 = w[0:1, :]                       # (1, D)
    w2 = w[1:2, :]                       # (1, D)
    w3 = w[2:3, :]                       # (1, D)

    # Rank-1 score terms, computed and added in f32 AFTER the matmul (no bf16
    # truncation of a/b; VPU mul + XLU lane-reduce, no extra MXU matvecs).
    a = jnp.sum(ctx.astype(f32) * w1, axis=-1, keepdims=True)     # (Bt, TLc, 1)
    b = jnp.sum(asp.astype(f32) * w2, axis=-1)                    # (Bt, TLa)

    # w3 scaling in the input dtype (bf16-native VPU on v6e/v7x).
    ctx_scaled = ctx * w3.astype(dt)                               # (Bt, TLc, D)

    # Single MXU pass per tile with K = D exactly (no augmentation columns,
    # no explicit transpose: contract the trailing feature dims).
    m = jax.lax.dot_general(
        ctx_scaled, asp,
        dimension_numbers=(((2,), (2,)), ((0,), (0,))),
        preferred_element_type=f32)                                # (Bt, TLc, TLa)

    out = m + a + b[:, None, :]
    out_ref[...] = out.astype(out_ref.dtype)


@functools.partial(jax.jit, static_argnames=("out_dtype", "tlc_cap", "tla_cap"))
def alignment_matrix(ctx, asp, w_u, *, out_dtype=None, tlc_cap=256, tla_cap=512):
    """Pallas implementation of AlignmentMatrix.forward.

    ctx: (B, Lc, 2H)   asp: (B, La, 2H)   (f32 or bf16, same dtype)
    w_u: (6H, 1)
    returns: (B, Lc, La), dtype = out_dtype or ctx.dtype.
    """
    B, Lc, D = ctx.shape
    Ba, La, Da = asp.shape
    assert Ba == B and Da == D
    assert w_u.shape == (3 * D, 1)
    assert ctx.dtype == asp.dtype
    out_dtype = ctx.dtype if out_dtype is None else out_dtype

    w = w_u.reshape(3, D).astype(jnp.float32)

    in_item = jnp.dtype(ctx.dtype).itemsize
    out_item = jnp.dtype(out_dtype).itemsize

    # --- Tile selection ------------------------------------------------------
    # Blocks that do not cover the full array dim must be 8-aligned (sublane /
    # Lc tile) or 128-aligned (lane / La tile of the output); full-extent
    # blocks are always legal, so no wrapper-side padding is needed and Pallas
    # masks the ragged last blocks.
    tlc = Lc if Lc <= tlc_cap else tlc_cap          # tlc_cap is a multiple of 8
    tla = La if La <= tla_cap else tla_cap          # tla_cap is a multiple of 128

    # Batch-blocked fast path: both sequences fit in one tile -> process
    # several batch elements per grid step (target ~4 MiB moved per step).
    bt = 1
    if tlc == Lc and tla == La and B > 1:
        per_b = (Lc + La) * D * in_item + Lc * La * out_item
        bt = _largest_divisor_leq(B, max(1, (4 << 20) // max(per_b, 1)))

    # Keep the per-step footprint under ~half of this generation's VMEM
    # (shrink batch block, then the sublane tile, then the lane tile).
    cap = _vmem_capacity_bytes()
    budget = cap // 2
    while _vmem_estimate(bt, tlc, tla, D, in_item, out_item) > budget:
        if bt > 1:
            bt = _largest_divisor_leq(B, bt // 2)
        elif tlc > 8:
            tlc = max(8, (tlc // 2) // 8 * 8)
        elif tla > 128:
            tla = max(128, (tla // 2) // 128 * 128)
        else:
            break

    lc_tiles = _cdiv(Lc, tlc)
    la_tiles = _cdiv(La, tla)
    nb = _cdiv(B, bt)   # bt divides B, so nb * bt == B

    # --- Loop order: keep the operand whose re-fetch would cost more resident.
    # ctx-resident (La tiles innermost): asp streamed lc_tiles times.
    # asp-resident (Lc tiles innermost): ctx streamed la_tiles times.
    ctx_resident = (Lc + lc_tiles * La) <= (La + la_tiles * Lc)
    if ctx_resident:
        grid = (nb, lc_tiles, la_tiles)
        ctx_map = lambda b, i, j: (b, i, 0)
        asp_map = lambda b, i, j: (b, j, 0)
        out_map = lambda b, i, j: (b, i, j)
    else:
        grid = (nb, la_tiles, lc_tiles)
        ctx_map = lambda b, j, i: (b, i, 0)
        asp_map = lambda b, j, i: (b, j, 0)
        out_map = lambda b, j, i: (b, i, j)
    w_map = lambda b, x, y: (0, 0)

    # Always set an explicit scoped-VMEM limit (v5e default is only 16 MiB),
    # capped safely below physical capacity (v7x: 64 MiB).
    est = _vmem_estimate(bt, tlc, tla, D, in_item, out_item)
    vmem_limit = int(min(cap - (8 << 20), max(est + (8 << 20), 24 << 20)))

    return pl.pallas_call(
        _alignment_kernel,
        out_shape=jax.ShapeDtypeStruct((B, Lc, La), out_dtype),
        grid_spec=pltpu.PrefetchScalarGridSpec(
            num_scalar_prefetch=0,
            grid=grid,
            in_specs=[
                pl.BlockSpec((bt, tlc, D), ctx_map),
                pl.BlockSpec((bt, tla, D), asp_map),
                pl.BlockSpec((3, D), w_map),
            ],
            out_specs=pl.BlockSpec((bt, tlc, tla), out_map),
        ),
        compiler_params=pltpu.CompilerParams(
            dimension_semantics=("parallel", "parallel", "parallel"),
            vmem_limit_bytes=vmem_limit,
        ),
    )(ctx, asp, w)


def alignment_matrix_ref(ctx, asp, w_u):
    """Pure-JAX reference mirroring the PyTorch double loop."""
    B, Lc, D = ctx.shape
    w1 = w_u[:D, 0]
    w2 = w_u[D:2 * D, 0]
    w3 = w_u[2 * D:, 0]
    ctx = ctx.astype(jnp.float32)
    asp = asp.astype(jnp.float32)
    a = ctx @ w1                                   # (B, Lc)
    b = asp @ w2                                   # (B, La)
    m = jnp.einsum("bid,bjd->bij", ctx * w3, asp)  # (B, Lc, La)
    return m + a[:, :, None] + b[:, None, :]


if __name__ == "__main__":
    # opt.hidden_dim = 32 -> feature dim 2H = 64, w_u shape (6H, 1) = (192, 1)
    hidden_dim = 32
    B, Lc, La = 2, 16, 8
    D = 2 * hidden_dim

    key = jax.random.PRNGKey(0)
    k_ctx, k_asp, k_w = jax.random.split(key, 3)
    ctx = jax.random.normal(k_ctx, (B, Lc, D), dtype=jnp.float32)
    asp = jax.random.normal(k_asp, (B, La, D), dtype=jnp.float32)
    # deterministic parameter init (synthetic; no checkpoint load)
    w_u = jax.random.normal(k_w, (6 * hidden_dim, 1), dtype=jnp.float32) * 0.1

    # f32 inputs -> f32 output (matches torch.zeros f32): exact-path check.
    out = jax.block_until_ready(alignment_matrix(ctx, asp, w_u))
    ref = alignment_matrix_ref(ctx, asp, w_u)
    assert out.shape == (B, Lc, La)
    assert out.dtype == jnp.float32
    assert jnp.allclose(out, ref, atol=1e-4, rtol=1e-4), "f32 mismatch vs reference"

    # bf16 inputs -> bf16 output (half the HBM traffic); rank-1 terms stay f32.
    ctx_bf = ctx.astype(jnp.bfloat16)
    asp_bf = asp.astype(jnp.bfloat16)
    out_bf = jax.block_until_ready(alignment_matrix(ctx_bf, asp_bf, w_u))
    ref_bf = alignment_matrix_ref(ctx_bf, asp_bf, w_u)
    assert out_bf.dtype == jnp.bfloat16
    assert jnp.allclose(out_bf.astype(jnp.float32), ref_bf, atol=2e-2, rtol=2e-2), \
        "bf16 mismatch vs reference"

    # Ragged multi-tile shape exercises the no-pad path (masked last blocks)
    # and the asp-resident loop order.
    B2, Lc2, La2, D2 = 3, 140, 20, 96
    k1, k2, k3 = jax.random.split(jax.random.PRNGKey(1), 3)
    ctx2 = jax.random.normal(k1, (B2, Lc2, D2), dtype=jnp.float32)
    asp2 = jax.random.normal(k2, (B2, La2, D2), dtype=jnp.float32)
    w_u2 = jax.random.normal(k3, (3 * D2, 1), dtype=jnp.float32) * 0.1
    out2 = jax.block_until_ready(
        alignment_matrix(ctx2, asp2, w_u2, tlc_cap=64, tla_cap=128))
    ref2 = alignment_matrix_ref(ctx2, asp2, w_u2)
    assert out2.shape == (B2, Lc2, La2)
    assert jnp.allclose(out2, ref2, atol=1e-3, rtol=1e-3), "ragged-tile mismatch"

    print("KERNEL_OK")
</pallas_src>

<mosaic_0001>
module attributes {stable_mosaic.version = 11 : i64} {
  func.func @_alignment_kernel(%arg0: i32, %arg1: i32, %arg2: i32, %arg3: memref<2x16x64xf32, #tpu.memory_space<vmem>>, %arg4: memref<2x8x64xf32, #tpu.memory_space<vmem>>, %arg5: memref<3x64xf32, #tpu.memory_space<vmem>>, %arg6: memref<2x16x8xf32, #tpu.memory_space<vmem>>) attributes {dimension_semantics = [#tpu.dimension_semantics<parallel>, #tpu.dimension_semantics<parallel>, #tpu.dimension_semantics<parallel>], iteration_bounds = array<i64: 1, 1, 1>, scalar_prefetch = 0 : i64, scratch_operands = 0 : i64, tpu.core_type = #tpu.core_type<tc>, window_params = [{transform_indices = @transform_0, window_bounds = array<i64: 2, 16, 64>}, {transform_indices = @transform_1, window_bounds = array<i64: 2, 8, 64>}, {pipeline_mode = #tpu.pipeline_mode<synchronous>, transform_indices = @transform_2, window_bounds = array<i64: 3, 64>}, {transform_indices = @transform_3, window_bounds = array<i64: 2, 16, 8>}]} {
    %c0 = arith.constant 0 : index
    %c0_0 = arith.constant 0 : index
    %c0_1 = arith.constant 0 : index
    %0 = vector.load %arg3[%c0, %c0_0, %c0_1] : memref<2x16x64xf32, #tpu.memory_space<vmem>>, vector<2x16x64xf32>
    %c0_2 = arith.constant 0 : index
    %c0_3 = arith.constant 0 : index
    %c0_4 = arith.constant 0 : index
    %1 = vector.load %arg4[%c0_2, %c0_3, %c0_4] : memref<2x8x64xf32, #tpu.memory_space<vmem>>, vector<2x8x64xf32>
    %c0_5 = arith.constant 0 : index
    %c0_6 = arith.constant 0 : index
    %2 = vector.load %arg5[%c0_5, %c0_6] : memref<3x64xf32, #tpu.memory_space<vmem>>, vector<3x64xf32>
    %3 = vector.extract_strided_slice %2 {offsets = [0, 0], sizes = [1, 64], strides = [1, 1]} : vector<3x64xf32> to vector<1x64xf32>
    %4 = vector.extract_strided_slice %2 {offsets = [1, 0], sizes = [1, 64], strides = [1, 1]} : vector<3x64xf32> to vector<1x64xf32>
    %5 = vector.extract_strided_slice %2 {offsets = [2, 0], sizes = [1, 64], strides = [1, 1]} : vector<3x64xf32> to vector<1x64xf32>
    %6 = vector.shape_cast %3 : vector<1x64xf32> to vector<1x1x64xf32>
    %7 = vector.broadcast %6 : vector<1x1x64xf32> to vector<2x16x64xf32>
    %8 = arith.mulf %0, %7 : vector<2x16x64xf32>
    %cst = arith.constant dense<0.000000e+00> : vector<2x16xf32>
    %9 = vector.multi_reduction <add>, %8, %cst [2] : vector<2x16x64xf32> to vector<2x16xf32>
    %10 = vector.shape_cast %9 : vector<2x16xf32> to vector<2x16x1xf32>
    %11 = vector.shape_cast %4 : vector<1x64xf32> to vector<1x1x64xf32>
    %12 = vector.broadcast %11 : vector<1x1x64xf32> to vector<2x8x64xf32>
    %13 = arith.mulf %1, %12 : vector<2x8x64xf32>
    %cst_7 = arith.constant dense<0.000000e+00> : vector<2x8xf32>
    %14 = vector.multi_reduction <add>, %13, %cst_7 [2] : vector<2x8x64xf32> to vector<2x8xf32>
    %15 = vector.shape_cast %5 : vector<1x64xf32> to vector<1x1x64xf32>
    %16 = vector.broadcast %15 : vector<1x1x64xf32> to vector<2x16x64xf32>
    %17 = arith.mulf %0, %16 : vector<2x16x64xf32>
    %cst_8 = arith.constant dense<0.000000e+00> : vector<2x16x8xf32>
    %18 = tpu.matmul %17, %1, %cst_8 {dimension_numbers = #tpu.dot_dimension_numbers<[2], [2], [1], [1], [0, 0, 0, 1, 1, 1], [0], [0]>} : vector<2x16x64xf32>, vector<2x8x64xf32>, vector<2x16x8xf32> -> vector<2x16x8xf32>
    %19 = vector.broadcast %10 : vector<2x16x1xf32> to vector<2x16x8xf32>
    %20 = arith.addf %18, %19 : vector<2x16x8xf32>
    %21 = vector.shape_cast %14 : vector<2x8xf32> to vector<2x1x8xf32>
    %22 = vector.broadcast %21 : vector<2x1x8xf32> to vector<2x16x8xf32>
    %23 = arith.addf %20, %22 : vector<2x16x8xf32>
    %c0_9 = arith.constant 0 : index
    %c0_10 = arith.constant 0 : index
    %c0_11 = arith.constant 0 : index
    %24 = vector.load %arg6[%c0_9, %c0_10, %c0_11] : memref<2x16x8xf32, #tpu.memory_space<vmem>>, vector<2x16x8xf32>
    tpu.vector_store %arg6[%c0_9, %c0_10, %c0_11], %23 {strides = array<i32>} : memref<2x16x8xf32, #tpu.memory_space<vmem>>, vector<2x16x8xf32>,
    return
  }
  func.func @transform_0(%arg0: i32, %arg1: i32, %arg2: i32) -> (i32, i32, i32) {
    %c0_i32 = arith.constant 0 : i32
    %c0_i32_0 = arith.constant 0 : i32
    return %arg0, %arg1, %c0_i32 : i32, i32, i32
  }
  func.func @transform_1(%arg0: i32, %arg1: i32, %arg2: i32) -> (i32, i32, i32) {
    %c0_i32 = arith.constant 0 : i32
    %c0_i32_0 = arith.constant 0 : i32
    return %arg0, %arg2, %c0_i32 : i32, i32, i32
  }
  func.func @transform_2(%arg0: i32, %arg1: i32, %arg2: i32) -> (i32, i32) {
    %c0_i32 = arith.constant 0 : i32
    %c0_i32_0 = arith.constant 0 : i32
    %c0_i32_1 = arith.constant 0 : i32
    return %c0_i32, %c0_i32_0 : i32, i32
  }
  func.func @transform_3(%arg0: i32, %arg1: i32, %arg2: i32) -> (i32, i32, i32) {
    %c0_i32 = arith.constant 0 : i32
    return %arg0, %arg1, %arg2 : i32, i32, i32
  }
}

</mosaic_0001>

<bundles_post_ra>
// kernel: alignment_matrix.1
= control target key start
LH: loop header
LB: loop body
LE: loop exit
PB: predicated region body
PF: predicated region fallthrough
CT: control target
= control target key end

     0   :  { %8 = vsyncpa [#allocation3], 0  ;;  %s434_s0 = inlined_call_operand.hbm [shape: f32[2,16,64], index: 0, kind: input, shape index: {}]   ;;  %s435_s1 = inlined_call_operand.hbm [shape: f32[2,8,64], index: 1, kind: input, shape index: {}]   ;;  %s436_s2 = inlined_call_operand.vmem [shape: f32[3,64], index: 2, kind: input, shape index: {}]   ;;  %s437_s3 = inlined_call_operand.vmem [shape: f32[2,16,8], index: 3, kind: output, shape index: {}]  }
   0x1   :  { %9 = vsyncpa [#allocation5], 0  ;;  %s375_s12 = smov [#allocation2]  }
   0x2   :  { %s15_s13 = sshll.u32 %s375_s12, 4  ;;  %s16_s13 = int_to_ptr.vmem [resolvable:$true] %s15_s13 }
   0x3   :  { %s339_s14 = scalar_lea.vmem %s16_s13, 512  ;;  %p344_p1 = scmp.lt.s32.totalorder %s16_s13, %s16_s13 }
   0x4   :  { %p340_p0 = scmp.ne.s32.totalorder %s16_s13, %s339_s14  ;;  %p345_p2 = scmp.lt.s32.totalorder %s339_s14, %s339_s14 }
   0x6   :  { %p346_p3 = por %p345_p2, %p344_p1 }
   0x8   :  { %p347_p4 = pnand %p346_p3, %p340_p0 }
   0xa   :  { %350 = shalt.err (!%p347_p4)
}
   0xb   :  { %s376_s15 = smov 128   ;;  %s377_s16 = smov 8  }
   0xc   :  { %21 = dma.hbm_to_vmem [thread:$0]  %s434_s0, 512, %s16_s13, [#allocation3], %s376_s15, %s376_s15, %s377_s16  }
   0xd   :  { %s378_s19 = smov [#allocation4]  }
   0xe   :  { %s27_s20 = sshll.u32 %s378_s19, 4  ;;  %s28_s20 = int_to_ptr.vmem [resolvable:$true] %s27_s20 }
   0xf   :  { %s359_s21 = scalar_lea.vmem %s28_s20, 256  ;;  %p364_p6 = scmp.lt.s32.totalorder %s28_s20, %s28_s20 }
  0x10   :  { %p360_p5 = scmp.ne.s32.totalorder %s28_s20, %s359_s21  ;;  %p365_p7 = scmp.lt.s32.totalorder %s359_s21, %s359_s21 }
  0x12   :  { %p366_p8 = por %p365_p7, %p364_p6 }
  0x14   :  { %p367_p9 = pnand %p366_p8, %p360_p5 }
  0x16   :  { %370 = shalt.err (!%p367_p9)
}
  0x17   :  { %33 = dma.hbm_to_vmem [thread:$0]  %s435_s1, 256, %s28_s20, [#allocation5], %s376_s15, %s376_s15, %s377_s16  }
  0x18   :  { %371 = dma.done.wait [#allocation3], 512  }
  0x19   :  { %372 = vsyncadd [#allocation3], 4294966784 }
  0x1a   :  { %373 = dma.done.wait [#allocation5], 256  }
  0x1b   :  { %374 = vsyncadd [#allocation5], 4294967040  ;;  %v49_v0 = vlaneseq  ;;  %vm57_vm0 = vcmask 523264   ;;  %v46_v5 = vld [vmem:[#allocation4] sm:$0xff]  ;;  %v47_v6 = vld [vmem:[#allocation4 + $0x8] sm:$0xff]  ;;  %vm294_vm1 = vcmask 64512  }
  0x1c   :  { %v42_v7 = vld [vmem:[#allocation2] sm:$0xff]  ;;  %317 = vmatprep.subr.msk.mxu0 %vm57_vm0, %v46_v5  ;;  %322 = vmatprep.subr.msk.mxu1 %vm57_vm0, %v47_v6  ;;  %v44_v9 = vld [vmem:[#allocation2 + $0x10] sm:$0xff]  ;;  %v43_v10 = vld [vmem:[#allocation2 + $0x8] sm:$0xff] }
  0x1d   :  { %v50_v1 = vshrl.u32 %v49_v0, 7  ;;  %v48_v8 = vld [vmem:[%s436_s2] sm:$0x7]  ;;  %318 = vmatpush3.xpose.msk.msra.mxu0 %vm57_vm0, %v46_v5  ;;  %323 = vmatpush3.xpose.msk.msra.mxu1 %vm57_vm0, %v47_v6  ;;  %v45_v12 = vld [vmem:[#allocation2 + $0x18] sm:$0xff]  ;;  %v261_v35 = vand.u32 127, %v49_v0 }
  0x1f   :  { %v84_v2 = vsub.s32 2, %v50_v1  ;;  %v51_v3 = vsub.s32 0, %v50_v1  ;;  %v72_v4 = vsub.s32 1, %v50_v1  ;;  %v264_v36 = vsub.s32 %v261_v35, %v50_v1 }
  0x21   :  { %v85_v11 = vrot.slane %v48_v8, %v84_v2  ;;  %v52_v13 = vrot.slane %v48_v8, %v51_v3  ;;  %v73_v14 = vrot.slane %v48_v8, %v72_v4 }
  0x23   :  { %v86_v15 = vmul.f32 %v85_v11, %v42_v7  ;;  %v88_v16 = vmul.f32 %v85_v11, %v44_v9  ;;  %v87_v17 = vmul.f32 %v85_v11, %v43_v10  ;;  %v89_v18 = vmul.f32 %v85_v11, %v45_v12 }
  0x24   :  { %v55_v19 = vmul.f32 %v52_v13, %v44_v9  ;;  %v53_v20 = vmul.f32 %v52_v13, %v42_v7  ;;  %v56_v21 = vmul.f32 %v52_v13, %v45_v12  ;;  %v54_v22 = vmul.f32 %v52_v13, %v43_v10 }
  0x25   :  { %319 = vmatprep.mubr.msk.f32.mxu0 %vm57_vm0, %v86_v15  ;;  %324 = vmatprep.mubr.msk.f32.mxu1 %vm57_vm0, %v88_v16  ;;  %v75_v27 = vmul.f32 %v73_v14, %v47_v6  ;;  %v74_v28 = vmul.f32 %v73_v14, %v46_v5 }
  0x26   :  { %320 = vmatmul.mubr.msk.f32.vlgmr.msra.gmra.mxu0 %vm57_vm0, %v87_v17  ;;  %325 = vmatmul.mubr.msk.f32.vlgmr.msra.gmra.mxu1 %vm57_vm0, %v89_v18  ;;  %v64_v23 = vsel %vm57_vm0, %v55_v19, 0.0  ;;  %v58_v24 = vsel %vm57_vm0, %v53_v20, 0.0  ;;  %v67_v25 = vsel %vm57_vm0, %v56_v21, 0.0  ;;  %v61_v26 = vsel %vm57_vm0, %v54_v22, 0.0 }
  0x27   :  { %65 = vadd.xlane.f32.xlu1 %v64_v23  ;;  %59 = vadd.xlane.f32.xlu0 %v58_v24  ;;  %v79_v29 = vsel %vm57_vm0, %v75_v27, 0.0  ;;  %v76_v30 = vsel %vm57_vm0, %v74_v28, 0.0 }
  0x2b   :  { %68 = vadd.xlane.f32.xlu1 %v67_v25  ;;  %62 = vadd.xlane.f32.xlu0 %v61_v26 }
  0x2f   :  { %80 = vadd.xlane.f32.xlu1 %v79_v29  ;;  %77 = vadd.xlane.f32.xlu0 %v76_v30 }
  0xb0   :  { %v66_v31 = vpop.xlane.xlu1 %65  ;;  %v60_v32 = vpop.xlane.xlu0 %59 }
  0xb4   :  { %v69_v33 = vpop.xlane.xlu1 %68  ;;  %v63_v34 = vpop.xlane.xlu0 %62 }
  0xb8   :  { %v81_v37 = vpop.xlane.xlu1 %80  ;;  %v78_v38 = vpop.xlane.xlu0 %77 }
  0xb9   :  { %v269_v39 = vrot.slane %v81_v37, %v264_v36  ;;  %v265_v40 = vrot.slane %v78_v38, %v264_v36 }
  0xe6   :  { %v326_v41 = vpop.f32.mrf.mxu1  ;;  %v321_v42 = vpop.f32.mrf.mxu0 }
  0xe7   :  { %v255_v43 = vadd.f32 %v326_v41, %v69_v33  ;;  %v171_v44 = vadd.f32 %v321_v42, %v63_v34 }
  0xe8   :  { %v165_v45 = vpop.f32.mrf.mxu0  ;;  %v249_v46 = vpop.f32.mrf.mxu1 }
  0xe9   :  { %v293_v47 = vadd.f32 %v269_v39, %v255_v43  ;;  %v291_v48 = vadd.f32 %v265_v40, %v171_v44  ;;  %v166_v49 = vadd.f32 %v165_v45, %v60_v32  ;;  %v250_v50 = vadd.f32 %v249_v46, %v66_v31 }
  0xeb   :  { %298 = vst.msk [vmem:[%s437_s3 + $0x18] sm:$0xff] %vm294_vm1, %v293_v47  ;;  %296 = vst.msk [vmem:[%s437_s3 + $0x8] sm:$0xff] %vm294_vm1, %v291_v48  ;;  %v290_v51 = vadd.f32 %v265_v40, %v166_v49  ;;  %v292_v52 = vadd.f32 %v269_v39, %v250_v50 }
  0xed   :  { %295 = vst.msk [vmem:[%s437_s3] sm:$0xff] %vm294_vm1, %v290_v51  ;;  %297 = vst.msk [vmem:[%s437_s3 + $0x10] sm:$0xff] %vm294_vm1, %v292_v52 }
  0xee   :  { %303 = vsyncpa [#allocation3], 1 }
  0xef   :  { %304 = vsyncpa [#allocation5], 1 }

</bundles_post_ra>
